<compile_context>
chip_gen: v5e
topology: v5e:2x2
jax: 0.10.0
libtpu: 0.0.40
codegen_flags: <defaults>
</compile_context>

<pallas_src>
import jax
import jax.numpy as jnp
from jax.experimental import pallas as pl
from jax.experimental.pallas import tpu as pltpu


def _round_up(x: int, m: int) -> int:
    return ((x + m - 1) // m) * m


def _cdiv(a: int, b: int) -> int:
    return (a + b - 1) // b


def _linear_sigmoid_kernel(b_ref, w_ref, x_ref, o_ref):
    # b_ref: (1,)        f32      SMEM  (bias scalar)
    # w_ref: (1, F)      x.dtype  VMEM  (weight row, resident across steps)
    # x_ref: (TB, F)     x.dtype  VMEM  (streamed batch tile)
    # o_ref: (1, 1, TB)  x.dtype  VMEM  (lane-dense output block)
    f = w_ref.shape[1]
    w8 = jnp.broadcast_to(w_ref[...], (8, f))        # sublane-replicate (tiny)
    z8 = jax.lax.dot_general(
        w8, x_ref[...],
        dimension_numbers=(((1,), (1,)), ((), ())),   # (8,F) @ (TB,F)^T -> (8,TB)
        preferred_element_type=jnp.float32,
    )
    z = z8[0:1, :] + b_ref[0]                         # rows identical; keep row 0
    y = 0.5 * (jnp.tanh(0.5 * z) + 1.0)               # sigmoid via EUP tanh
    o_ref[0] = y.astype(o_ref.dtype)


@jax.jit
def model_forward(x, w, b):
    """y = sigmoid(x @ w.T + b).  x: (..., F); w: (1,F)/(F,)/(F,1); b: (1,)/()"""
    orig_shape = x.shape
    F = orig_shape[-1]
    B = 1
    for d in orig_shape[:-1]:
        B *= d
    x2 = jnp.reshape(x, (B, F))                       # collapse leading dims (free)

    w_row = jnp.reshape(w, (1, F)).astype(x.dtype)    # tiny casts only
    b_vec = jnp.reshape(b, (1,)).astype(jnp.float32)

    itemsize = x2.dtype.itemsize

    if B <= 128:
        # Single exact-size block: no overhang, no padding copy.
        tb = max(_round_up(B, 8), 8)
    else:
        # Size the x tile to ~4 MiB so per-step overhead is amortized for any F.
        target_tile_bytes = 4 << 20
        tb = target_tile_bytes // (F * itemsize)
        tb = max(128, min(int(tb), 1 << 15))
        tb = (tb // 128) * 128
        # Megacore (v7x): keep at least 2 grid steps so both TCs stream x.
        tb = min(tb, _round_up(_cdiv(B, 2), 128))
        tb = max(tb, 128)
    g = _cdiv(B, tb)

    # Explicit scoped-VMEM budget: double-buffered x tile + output + weight.
    needed = 2 * (tb * F * itemsize) + 2 * (tb * itemsize) + 2 * (F * itemsize)
    vmem_limit = int(min(max(needed + (4 << 20), 16 << 20), 48 << 20))

    out = pl.pallas_call(
        _linear_sigmoid_kernel,
        out_shape=jax.ShapeDtypeStruct((g, 1, tb), x2.dtype),
        grid=(g,),
        in_specs=[
            pl.BlockSpec(memory_space=pltpu.MemorySpace.SMEM),  # bias scalar
            pl.BlockSpec((1, F), lambda i: (0, 0)),             # weight, resident
            pl.BlockSpec((tb, F), lambda i: (i, 0)),            # batch tile stream
        ],
        out_specs=pl.BlockSpec((1, 1, tb), lambda i: (i, 0, 0)),
        compiler_params=pltpu.CompilerParams(
            dimension_semantics=("parallel",),
            vmem_limit_bytes=vmem_limit,
        ),
    )(b_vec, w_row, x2)

    # Lane-dense slab -> (..., 1), dropping any ragged-tail rows.
    y = out.reshape(g * tb)[:B]
    return y.reshape(orig_shape[:-1] + (1,))


if __name__ == "__main__":
    key = jax.random.PRNGKey(0)
    kx, kw, kb, kx2 = jax.random.split(key, 4)

    # Small shapes consistent with the module: batch=8, n_input_features=32.
    B, F = 8, 32
    x = jax.random.normal(kx, (B, F), dtype=jnp.float32)

    # Parameters in nn.Linear's native layout: weight (1, F), bias (1,).
    bound = 1.0 / float(F) ** 0.5
    w = jax.random.uniform(kw, (1, F), minval=-bound, maxval=bound, dtype=jnp.float32)
    b = jax.random.uniform(kb, (1,), minval=-bound, maxval=bound, dtype=jnp.float32)

    y = model_forward(x, w, b)
    jax.block_until_ready(y)
    y_ref = jax.nn.sigmoid(x @ w.T + b)
    assert y.shape == (B, 1), y.shape
    assert jnp.allclose(y, y_ref, atol=1e-5, rtol=1e-5)

    # Second check: multi-step grid with a ragged last batch block (no padding).
    B2 = 300
    x2 = jax.random.normal(kx2, (B2, F), dtype=jnp.float32)
    y2 = model_forward(x2, w, b)
    jax.block_until_ready(y2)
    y2_ref = jax.nn.sigmoid(x2 @ w.T + b)
    assert y2.shape == (B2, 1), y2.shape
    assert jnp.allclose(y2, y2_ref, atol=1e-5, rtol=1e-5)

    print("KERNEL_OK")
</pallas_src>

<mosaic_0001>
module attributes {stable_mosaic.version = 11 : i64} {
  func.func @_linear_sigmoid_kernel(%arg0: i32, %arg1: memref<1xf32, #tpu.memory_space<smem>>, %arg2: memref<1x32xf32, #tpu.memory_space<vmem>>, %arg3: memref<8x32xf32, #tpu.memory_space<vmem>>, %arg4: memref<1x1x8xf32, #tpu.memory_space<vmem>>) attributes {dimension_semantics = [#tpu.dimension_semantics<parallel>], iteration_bounds = array<i64: 1>, scalar_prefetch = 0 : i64, scratch_operands = 0 : i64, tpu.core_type = #tpu.core_type<tc>, window_params = [{transform_indices = @transform_0, window_bounds = array<i64: 1>}, {pipeline_mode = #tpu.pipeline_mode<synchronous>, transform_indices = @transform_1, window_bounds = array<i64: 1, 32>}, {transform_indices = @transform_2, window_bounds = array<i64: 8, 32>}, {transform_indices = @transform_3, window_bounds = array<i64: 1, 1, 8>}]} {
    %c0 = arith.constant 0 : index
    %c0_0 = arith.constant 0 : index
    %0 = vector.load %arg2[%c0, %c0_0] : memref<1x32xf32, #tpu.memory_space<vmem>>, vector<1x32xf32>
    %1 = vector.shape_cast %0 : vector<1x32xf32> to vector<1x32xf32>
    %2 = vector.broadcast %1 : vector<1x32xf32> to vector<8x32xf32>
    %c0_1 = arith.constant 0 : index
    %c0_2 = arith.constant 0 : index
    %3 = vector.load %arg3[%c0_1, %c0_2] : memref<8x32xf32, #tpu.memory_space<vmem>>, vector<8x32xf32>
    %cst = arith.constant dense<0.000000e+00> : vector<8x8xf32>
    %4 = tpu.matmul %2, %3, %cst {dimension_numbers = #tpu.dot_dimension_numbers<[1], [1], [0], [0], [0, 0, 1, 0], [], []>} : vector<8x32xf32>, vector<8x32xf32>, vector<8x8xf32> -> vector<8x8xf32>
    %5 = vector.extract_strided_slice %4 {offsets = [0, 0], sizes = [1, 8], strides = [1, 1]} : vector<8x8xf32> to vector<1x8xf32>
    %c0_3 = arith.constant 0 : index
    %6 = memref.load %arg1[%c0_3] : memref<1xf32, #tpu.memory_space<smem>>
    %7 = vector.broadcast %6 : f32 to vector<1x8xf32>
    %8 = arith.addf %5, %7 : vector<1x8xf32>
    %cst_4 = arith.constant 5.000000e-01 : f32
    %9 = vector.broadcast %cst_4 : f32 to vector<1x8xf32>
    %10 = arith.mulf %9, %8 : vector<1x8xf32>
    %11 = math.tanh %10 : vector<1x8xf32>
    %cst_5 = arith.constant 1.000000e+00 : f32
    %12 = vector.broadcast %cst_5 : f32 to vector<1x8xf32>
    %13 = arith.addf %11, %12 : vector<1x8xf32>
    %cst_6 = arith.constant 5.000000e-01 : f32
    %14 = vector.broadcast %cst_6 : f32 to vector<1x8xf32>
    %15 = arith.mulf %14, %13 : vector<1x8xf32>
    %c0_7 = arith.constant 0 : index
    %c0_8 = arith.constant 0 : index
    %c0_9 = arith.constant 0 : index
    %16 = vector.load %arg4[%c0_7, %c0_8, %c0_9] : memref<1x1x8xf32, #tpu.memory_space<vmem>>, vector<1x1x8xf32>
    %17 = vector.shape_cast %16 : vector<1x1x8xf32> to vector<1x8xf32>
    %18 = vector.shape_cast %15 : vector<1x8xf32> to vector<1x1x8xf32>
    tpu.vector_store %arg4[%c0_7, %c0_8, %c0_9], %18 {strides = array<i32>} : memref<1x1x8xf32, #tpu.memory_space<vmem>>, vector<1x1x8xf32>,
    return
  }
  func.func @transform_0(%arg0: i32) -> i32 {
    %c0_i32 = arith.constant 0 : i32
    %c0_i32_0 = arith.constant 0 : i32
    return %c0_i32 : i32
  }
  func.func @transform_1(%arg0: i32) -> (i32, i32) {
    %c0_i32 = arith.constant 0 : i32
    %c0_i32_0 = arith.constant 0 : i32
    %c0_i32_1 = arith.constant 0 : i32
    return %c0_i32, %c0_i32_0 : i32, i32
  }
  func.func @transform_2(%arg0: i32) -> (i32, i32) {
    %c0_i32 = arith.constant 0 : i32
    %c0_i32_0 = arith.constant 0 : i32
    return %arg0, %c0_i32 : i32, i32
  }
  func.func @transform_3(%arg0: i32) -> (i32, i32, i32) {
    %c0_i32 = arith.constant 0 : i32
    %c0_i32_0 = arith.constant 0 : i32
    %c0_i32_1 = arith.constant 0 : i32
    return %arg0, %c0_i32, %c0_i32_0 : i32, i32, i32
  }
}

</mosaic_0001>

<bundles_post_ra>
// kernel: model_forward.1
= control target key start
LH: loop header
LB: loop body
LE: loop exit
PB: predicated region body
PF: predicated region fallthrough
CT: control target
= control target key end

     0   :  { %9 = vsyncpa [#allocation4], 0  ;;  %s179_s0 = inlined_call_operand.<no memory space> [shape: f32[1], index: 0, kind: input, shape index: {}]   ;;  %s180_s1 = inlined_call_operand.vmem [shape: f32[1,32], index: 1, kind: input, shape index: {}]   ;;  %s181_s2 = inlined_call_operand.hbm [shape: f32[8,32], index: 2, kind: input, shape index: {}]   ;;  %s182_s3 = inlined_call_operand.hbm [shape: f32[1,1,8], index: 3, kind: output, shape index: {}]  }
   0x1   :  { %10 = vsyncpa [#allocation5], 0  ;;  %s20_s14 = sshll.u32 %s181_s2, 4  ;;  %s145_s15 = smov [#allocation3]   ;;  %s21_s14 = int_to_ptr.hbm [resolvable:$true] %s20_s14 }
   0x2   :  { %s22_s16 = sshll.u32 %s145_s15, 4  ;;  %s23_s16 = int_to_ptr.vmem [resolvable:$true] %s22_s16 }
   0x3   :  { %25 = dma.hbm_to_vmem [thread:$0]  %s21_s14, 128, %s23_s16, [#allocation4]  }
   0x4   :  { %141 = dma.done.wait [#allocation4], 128  }
   0x5   :  { %142 = vsyncadd [#allocation4], 4294967168  ;;  %vm34_vm0 = vcmask 261120   ;;  %v33_v0 = vld [vmem:[#allocation3] sm:$0xff]  ;;  %v61_v2 = vstv %s179_s0  ;;  %s146_s2 = smov [#allocation6]   ;;  %s76_s24 = sshll.u32 %s182_s3, 4  ;;  %s77_s24 = int_to_ptr.hbm [resolvable:$true] %s76_s24 }
   0x6   :  { %v90_v1 = vld [vmem:[%s180_s1] ss:$0 sm:$0xff]  ;;  %86 = vmatpush.xpose.msk.msra.mxu0 %vm34_vm0, %v33_v0  ;;  %s74_s21 = sshll.u32 %s146_s2, 4  ;;  %vm67_vm1 = vcmask 57344   ;;  %s75_s21 = int_to_ptr.vmem [resolvable:$true] %s74_s21 }
   0x9   :  { %87 = vmatmul.msk.f32.vlgmr.msra.gmra.mxu0 %vm34_vm0, %v90_v1 }
  0x86   :  { %v57_v3 = vpop.f32.mrf.mxu0 }
  0x87   :  { %v62_v4 = vadd.f32 %v61_v2, %v57_v3 }
  0x89   :  { %v63_v5 = vmul.f32 0.5, %v62_v4 }
  0x8b   :  { %91 = vtanh.f32 %v63_v5 }
  0x91   :  { %v92_v6 = vpop.eup %91 }
  0x92   :  { %v65_v7 = vadd.f32 1.0, %v92_v6 }
  0x94   :  { %v66_v8 = vmul.f32 0.5, %v65_v7 }
  0x96   :  { %68 = vst.msk [vmem:[#allocation6] sm:$0x1] %vm67_vm1, %v66_v8 }
  0x97   :  { %79 = dma.vmem_to_hbm [thread:$0]  %s75_s21, 16, %s77_s24, [#allocation5]  }
  0x98   :  { %143 = dma.done.wait [#allocation5], 16  }
  0x99   :  { %144 = vsyncadd [#allocation5], 4294967280 }
  0x9a   :  { %84 = vsyncpa [#allocation4], 1 }
  0x9b   :  { %85 = vsyncpa [#allocation5], 1 }

</bundles_post_ra>
